<compile_context>
chip_gen: v7x
topology: tpu7x:2x2x1
jax: 0.10.0
libtpu: 0.0.40
codegen_flags: <defaults>
</compile_context>

<pallas_src>
import math

import jax
import jax.numpy as jnp
from jax.experimental import pallas as pl
from jax.experimental.pallas import tpu as pltpu


def _round_up(a: int, b: int) -> int:
    return (a + b - 1) // b * b


def _cdiv(a: int, b: int) -> int:
    return (a + b - 1) // b


def _linear_bias_kernel(x_ref, w_ref, b_ref, o_ref, acc_ref):
    # x_ref:   (tm, tk)  input rows tile
    # w_ref:   (tk, tn)  weight tile already in MXU-native (K, N) orientation
    # b_ref:   (1, tn)   bias tile (f32)
    # o_ref:   (tm, tn)  output tile (written once, at the last K step)
    # acc_ref: (tm, tn)  f32 accumulator scratch, lives across the K grid axis
    k = pl.program_id(2)

    @pl.when(k == 0)
    def _():
        # Fold the bias into the accumulator init -> no epilogue VPU add.
        acc_ref[...] = jnp.broadcast_to(
            b_ref[...].astype(jnp.float32), acc_ref.shape)

    acc_ref[...] += jnp.dot(x_ref[...], w_ref[...],
                            preferred_element_type=jnp.float32)

    @pl.when(k == pl.num_programs(2) - 1)
    def _():
        o_ref[...] = acc_ref[...].astype(o_ref.dtype)


def _linear_nobias_kernel(x_ref, w_ref, o_ref, acc_ref):
    k = pl.program_id(2)

    @pl.when(k == 0)
    def _():
        acc_ref[...] = jnp.zeros_like(acc_ref)

    acc_ref[...] += jnp.dot(x_ref[...], w_ref[...],
                            preferred_element_type=jnp.float32)

    @pl.when(k == pl.num_programs(2) - 1)
    def _():
        o_ref[...] = acc_ref[...].astype(o_ref.dtype)


def pallas_linear(x, weight, bias=None, *,
                  tm=512, tn=512, tk=1024, compute_dtype=None):
    """y = x @ weight.T + bias  (torch.nn.functional.linear semantics).

    `weight` is the native PyTorch (out_features, in_features) parameter; it is
    transposed/padded once here.  For a static layer weight this prep should be
    hoisted out of the hot loop by the caller (it is a one-time cost).
    compute_dtype=jnp.bfloat16 is recommended on v5e/v6e/v7x (bf16-native MXU,
    half the HBM bytes); accumulation and the bias add stay in f32 either way.
    Default compute_dtype=None keeps the reference f32 numerics.
    """
    # TODO(synk): batched-weight variant of the module (batch_size is not None,
    # weight (B, N, K)) is not implemented here; only the standard 2-D path.
    M, K = x.shape
    N, K2 = weight.shape
    assert K == K2, "in_features mismatch"
    out_dtype = x.dtype
    has_bias = bias is not None

    # ---- tile selection ------------------------------------------------------
    # Blocks' last-two dims must be (8,128)-divisible (or full-dim); clamp for
    # small problems so padding stays minimal (e.g. M=16 -> tm=16, not 512).
    tm = max(8, min(tm, _round_up(M, 8)))
    tn = max(128, min(tn, _round_up(N, 128)))
    tk = max(128, min(tk, _round_up(K, 128)))

    # v7x megacore: make sure the "parallel" (i, j) grid has >= 2 tiles so both
    # TensorCores get work; only split N if it does not add any extra padding.
    if _cdiv(M, tm) * _cdiv(N, tn) < 2:
        tn_half = _round_up(_cdiv(N, 2), 128)
        if 128 <= tn_half < tn and _round_up(N, tn_half) <= _round_up(N, 128):
            tn = tn_half

    Mp, Np, Kp = _round_up(M, tm), _round_up(N, tn), _round_up(K, tk)

    # ---- operand prep (one-time for a static layer weight) -------------------
    wt = weight.T                                      # (K, N): MXU-native
    if (Mp, Kp) != (M, K):
        x = jnp.pad(x, ((0, Mp - M), (0, Kp - K)))     # zero K-pad adds nothing
    if (Kp, Np) != (K, N):
        wt = jnp.pad(wt, ((0, Kp - K), (0, Np - N)))
    if compute_dtype is not None:
        x = x.astype(compute_dtype)
        wt = wt.astype(compute_dtype)

    # Small-M (weight-streaming) regime: deepen the weight pipeline so the DMA
    # engine stays saturated while compute is trivially cheap.
    small_m = Mp <= tm
    n_steps = (Np // tn) * (Kp // tk)
    if small_m and n_steps >= 3:
        w_spec = pl.BlockSpec((tk, tn), lambda i, j, k: (k, j),
                              pipeline_mode=pl.Buffered(3))
        w_bufs = 3
    else:
        w_spec = pl.BlockSpec((tk, tn), lambda i, j, k: (k, j))
        w_bufs = 2

    operands = [x, wt]
    in_specs = [
        pl.BlockSpec((tm, tk), lambda i, j, k: (i, k)),   # x row/K tile
        w_spec,                                           # weight (K, N) tile
    ]
    if has_bias:
        b = bias.reshape(1, N).astype(jnp.float32)
        if Np != N:
            b = jnp.pad(b, ((0, 0), (0, Np - N)))
        operands.append(b)
        in_specs.append(pl.BlockSpec((1, tn), lambda i, j, k: (0, j)))
        kernel = _linear_bias_kernel
    else:
        kernel = _linear_nobias_kernel                    # no zero-bias stream

    grid = (Mp // tm, Np // tn, Kp // tk)

    # ---- VMEM budget: double-buffered tiles + f32 accumulator ---------------
    cbytes = jnp.dtype(x.dtype).itemsize
    obytes = jnp.dtype(out_dtype).itemsize
    vmem_needed = (2 * tm * tk * cbytes            # x double-buffer
                   + w_bufs * tk * tn * cbytes     # weight buffers
                   + 2 * tm * tn * obytes          # output double-buffer
                   + tm * tn * 4                   # f32 accumulator scratch
                   + (2 * tn * 4 if has_bias else 0))
    try:
        phys_vmem = pltpu.get_tpu_info().vmem_capacity_bytes
    except Exception:
        phys_vmem = 64 * 1024 * 1024               # v7x per-TC worst case
    vmem_limit = min(max(vmem_needed + (4 << 20), 32 << 20),
                     max(32 << 20, phys_vmem - (16 << 20)))

    cost = pl.CostEstimate(
        flops=2 * M * N * K,
        transcendentals=0,
        bytes_accessed=(x.size * x.dtype.itemsize
                        + wt.size * wt.dtype.itemsize
                        + (b.size * 4 if has_bias else 0)
                        + M * N * obytes),
    )

    out = pl.pallas_call(
        kernel,
        out_shape=jax.ShapeDtypeStruct((Mp, Np), out_dtype),
        grid_spec=pltpu.PrefetchScalarGridSpec(
            num_scalar_prefetch=0,
            grid=grid,
            in_specs=in_specs,
            out_specs=pl.BlockSpec((tm, tn), lambda i, j, k: (i, j)),
            scratch_shapes=[pltpu.VMEM((tm, tn), jnp.float32)],
        ),
        compiler_params=pltpu.CompilerParams(
            dimension_semantics=("parallel", "parallel", "arbitrary"),
            vmem_limit_bytes=int(vmem_limit),
        ),
        cost_estimate=cost,
    )(*operands)

    return out[:M, :N]


if __name__ == "__main__":
    # Module config (small, consistent with Linear(in_features, out_features)):
    in_features = 32
    out_features = 64
    batch = 16

    key = jax.random.PRNGKey(0)
    kx, kw, kb, kx2, kw2, kb2 = jax.random.split(key, 6)

    # Deterministic parameter init mirroring reset_parameters():
    # uniform(-stdv, stdv) with stdv = 1/sqrt(in_features)   (weight.size(1))
    stdv = 1.0 / math.sqrt(in_features)
    weight = jax.random.uniform(
        kw, (out_features, in_features), jnp.float32, minval=-stdv, maxval=stdv)
    bias = jax.random.uniform(
        kb, (out_features,), jnp.float32, minval=-stdv, maxval=stdv)
    x = jax.random.normal(kx, (batch, in_features), jnp.float32)

    y = jax.block_until_ready(pallas_linear(x, weight, bias))
    y_ref = jnp.dot(x, weight.T, precision=jax.lax.Precision.HIGHEST) + bias
    assert y.shape == (batch, out_features)
    assert jnp.allclose(y, y_ref, atol=1e-4, rtol=1e-5)

    # bf16-operand path (recommended for perf); f32 accumulate, looser tol.
    y_bf = jax.block_until_ready(
        pallas_linear(x, weight, bias, compute_dtype=jnp.bfloat16))
    assert jnp.allclose(y_bf, y_ref, atol=2e-2, rtol=2e-2)

    # Non-aligned shapes exercising padding, the full (M, N, K) tiled grid with
    # the K-axis accumulator, and the no-bias kernel variant.
    M2, K2, N2 = 260, 640, 320
    stdv2 = 1.0 / math.sqrt(K2)
    w2 = jax.random.uniform(kw2, (N2, K2), jnp.float32, minval=-stdv2, maxval=stdv2)
    b2 = jax.random.uniform(kb2, (N2,), jnp.float32, minval=-stdv2, maxval=stdv2)
    x2 = jax.random.normal(kx2, (M2, K2), jnp.float32)

    y2 = jax.block_until_ready(pallas_linear(x2, w2, b2))
    y2_ref = jnp.dot(x2, w2.T, precision=jax.lax.Precision.HIGHEST) + b2
    assert y2.shape == (M2, N2)
    assert jnp.allclose(y2, y2_ref, atol=2e-4, rtol=1e-5)

    y3 = jax.block_until_ready(pallas_linear(x2, w2, None))
    y3_ref = jnp.dot(x2, w2.T, precision=jax.lax.Precision.HIGHEST)
    assert jnp.allclose(y3, y3_ref, atol=2e-4, rtol=1e-5)

    print("KERNEL_OK")
</pallas_src>

<mosaic_0001>
module attributes {stable_mosaic.version = 11 : i64} {
  func.func @_linear_bias_kernel(%arg0: i32, %arg1: i32, %arg2: i32, %arg3: memref<16x128xf32, #tpu.memory_space<vmem>>, %arg4: memref<128x128xf32, #tpu.memory_space<vmem>>, %arg5: memref<1x128xf32, #tpu.memory_space<vmem>>, %arg6: memref<16x128xf32, #tpu.memory_space<vmem>>, %arg7: memref<16x128xf32, #tpu.memory_space<vmem>>) attributes {dimension_semantics = [#tpu.dimension_semantics<parallel>, #tpu.dimension_semantics<parallel>, #tpu.dimension_semantics<arbitrary>], iteration_bounds = array<i64: 1, 1, 1>, scalar_prefetch = 0 : i64, scratch_operands = 1 : i64, tpu.core_type = #tpu.core_type<tc>, window_params = [{transform_indices = @transform_0, window_bounds = array<i64: 16, 128>}, {transform_indices = @transform_1, window_bounds = array<i64: 128, 128>}, {transform_indices = @transform_2, window_bounds = array<i64: 1, 128>}, {transform_indices = @transform_3, window_bounds = array<i64: 16, 128>}]} {
    %c0_i32 = arith.constant 0 : i32
    %0 = arith.cmpi eq, %arg2, %c0_i32 : i32
    %1 = arith.extui %0 : i1 to i32
    %c0_i32_0 = arith.constant 0 : i32
    %2 = arith.cmpi ne, %1, %c0_i32_0 : i32
    scf.if %2 {
      %c0_10 = arith.constant 0 : index
      %c0_11 = arith.constant 0 : index
      %12 = vector.load %arg5[%c0_10, %c0_11] : memref<1x128xf32, #tpu.memory_space<vmem>>, vector<1x128xf32>
      %13 = vector.shape_cast %12 : vector<1x128xf32> to vector<1x128xf32>
      %14 = vector.broadcast %13 : vector<1x128xf32> to vector<16x128xf32>
      %c0_12 = arith.constant 0 : index
      %c0_13 = arith.constant 0 : index
      %15 = vector.load %arg7[%c0_12, %c0_13] : memref<16x128xf32, #tpu.memory_space<vmem>>, vector<16x128xf32>
      tpu.vector_store %arg7[%c0_12, %c0_13], %14 {strides = array<i32>} : memref<16x128xf32, #tpu.memory_space<vmem>>, vector<16x128xf32>,
    } else {
    }
    %c0 = arith.constant 0 : index
    %c0_1 = arith.constant 0 : index
    %3 = vector.load %arg7[%c0, %c0_1] : memref<16x128xf32, #tpu.memory_space<vmem>>, vector<16x128xf32>
    %c0_2 = arith.constant 0 : index
    %c0_3 = arith.constant 0 : index
    %4 = vector.load %arg3[%c0_2, %c0_3] : memref<16x128xf32, #tpu.memory_space<vmem>>, vector<16x128xf32>
    %c0_4 = arith.constant 0 : index
    %c0_5 = arith.constant 0 : index
    %5 = vector.load %arg4[%c0_4, %c0_5] : memref<128x128xf32, #tpu.memory_space<vmem>>, vector<128x128xf32>
    %cst = arith.constant dense<0.000000e+00> : vector<16x128xf32>
    %6 = tpu.matmul %4, %5, %cst {dimension_numbers = #tpu.dot_dimension_numbers<[1], [0], [0], [1], [0, 0, 1, 1], [], []>} : vector<16x128xf32>, vector<128x128xf32>, vector<16x128xf32> -> vector<16x128xf32>
    %7 = arith.addf %3, %6 : vector<16x128xf32>
    %c0_6 = arith.constant 0 : index
    %c0_7 = arith.constant 0 : index
    %8 = vector.load %arg7[%c0_6, %c0_7] : memref<16x128xf32, #tpu.memory_space<vmem>>, vector<16x128xf32>
    tpu.vector_store %arg7[%c0_6, %c0_7], %7 {strides = array<i32>} : memref<16x128xf32, #tpu.memory_space<vmem>>, vector<16x128xf32>,
    %c0_i32_8 = arith.constant 0 : i32
    %9 = arith.cmpi eq, %arg2, %c0_i32_8 : i32
    %10 = arith.extui %9 : i1 to i32
    %c0_i32_9 = arith.constant 0 : i32
    %11 = arith.cmpi ne, %10, %c0_i32_9 : i32
    scf.if %11 {
      %c0_10 = arith.constant 0 : index
      %c0_11 = arith.constant 0 : index
      %12 = vector.load %arg7[%c0_10, %c0_11] : memref<16x128xf32, #tpu.memory_space<vmem>>, vector<16x128xf32>
      %c0_12 = arith.constant 0 : index
      %c0_13 = arith.constant 0 : index
      %13 = vector.load %arg6[%c0_12, %c0_13] : memref<16x128xf32, #tpu.memory_space<vmem>>, vector<16x128xf32>
      tpu.vector_store %arg6[%c0_12, %c0_13], %12 {strides = array<i32>} : memref<16x128xf32, #tpu.memory_space<vmem>>, vector<16x128xf32>,
    } else {
    }
    return
  }
  func.func @transform_0(%arg0: i32, %arg1: i32, %arg2: i32) -> (i32, i32) {
    %c0_i32 = arith.constant 0 : i32
    return %arg0, %arg2 : i32, i32
  }
  func.func @transform_1(%arg0: i32, %arg1: i32, %arg2: i32) -> (i32, i32) {
    %c0_i32 = arith.constant 0 : i32
    return %arg2, %arg1 : i32, i32
  }
  func.func @transform_2(%arg0: i32, %arg1: i32, %arg2: i32) -> (i32, i32) {
    %c0_i32 = arith.constant 0 : i32
    %c0_i32_0 = arith.constant 0 : i32
    return %c0_i32, %arg1 : i32, i32
  }
  func.func @transform_3(%arg0: i32, %arg1: i32, %arg2: i32) -> (i32, i32) {
    %c0_i32 = arith.constant 0 : i32
    return %arg0, %arg1 : i32, i32
  }
}

</mosaic_0001>

<bundles_post_ra>
// kernel: tpu_custom_call.1
= control target key start
LH: loop header
LB: loop body
LE: loop exit
PB: predicated region body
PF: predicated region fallthrough
CT: control target
= control target key end

     0   :  { %8 = vsyncpa [#allocation4], 0  ;;  %s416_s0 = inlined_call_operand.hbm [shape: f32[16,128], index: 0, kind: input, shape index: {}]   ;;  %s417_s1 = inlined_call_operand.hbm [shape: f32[128,128], index: 1, kind: input, shape index: {}]   ;;  %s418_s2 = inlined_call_operand.vmem [shape: f32[1,128], index: 2, kind: input, shape index: {}]   ;;  %s419_s3 = inlined_call_operand.hbm [shape: f32[16,128], index: 3, kind: output, shape index: {}]  }
   0x1   :  { %9 = vsyncpa [#allocation7], 0 }
   0x2   :  { %10 = vsyncpa [#allocation5], 0  ;;  %s343_s12 = smov [#allocation3]   ;;  %s271_s16 = scalar_lea.hbm %s416_s0, 256 }
   0x3   :  { %s16_s13 = sshll.u32 %s343_s12, 4  ;;  %p272_p0 = scmp.ne.s32.totalorder %s416_s0, %s271_s16  ;;  %s17_s13 = int_to_ptr.vmem [resolvable:$true] %s16_s13 }
   0x4   :  { %p275_p1 = scmp.lt.u32.totalorder %s271_s16, %s416_s0 }
   0x6   :  { %p277_p2 = pnand %p275_p1, %p272_p0 }
   0x8   :  { %280 = shalt.err (!%p277_p2)
}
   0x9   :  { %s281_s21 = scalar_lea.vmem %s17_s13, 256  ;;  %p286_p4 = scmp.lt.s32.totalorder %s17_s13, %s17_s13 }
   0xa   :  { %p282_p3 = scmp.ne.s32.totalorder %s17_s13, %s281_s21  ;;  %p287_p5 = scmp.lt.s32.totalorder %s281_s21, %s281_s21 }
   0xc   :  { %p288_p6 = por %p287_p5, %p286_p4 }
   0xe   :  { %p289_p7 = pnand %p288_p6, %p282_p3 }
  0x10   :  { %292 = shalt.err (!%p289_p7)
}
  0x11   :  { %s344_s22 = smov 128   ;;  %s345_s23 = smov 8  }
  0x12   :  { %22 = dma.hbm_to_vmem [thread:$0]  %s416_s0, 256, %s17_s13, [#allocation4], %s344_s22, %s344_s22, %s345_s23  }
  0x13   :  { %s346_s26 = smov [#allocation6]   ;;  %s293_s30 = scalar_lea.hbm %s417_s1, 2048 }
  0x14   :  { %s28_s27 = sshll.u32 %s346_s26, 4  ;;  %p294_p8 = scmp.ne.s32.totalorder %s417_s1, %s293_s30  ;;  %s29_s27 = int_to_ptr.vmem [resolvable:$true] %s28_s27 }
  0x15   :  { %p297_p9 = scmp.lt.u32.totalorder %s293_s30, %s417_s1 }
  0x17   :  { %p299_p10 = pnand %p297_p9, %p294_p8 }
  0x19   :  { %302 = shalt.err (!%p299_p10)
}
  0x1a   :  { %s303_s8 = scalar_lea.vmem %s29_s27, 2048  ;;  %p308_p12 = scmp.lt.s32.totalorder %s29_s27, %s29_s27 }
  0x1b   :  { %p304_p11 = scmp.ne.s32.totalorder %s29_s27, %s303_s8  ;;  %p309_p13 = scmp.lt.s32.totalorder %s303_s8, %s303_s8 }
  0x1d   :  { %p310_p0 = por %p309_p13, %p308_p12 }
  0x1f   :  { %p311_p1 = pnand %p310_p0, %p304_p11 }
  0x21   :  { %314 = shalt.err (!%p311_p1)
}
  0x22   :  { %34 = dma.hbm_to_vmem [thread:$0]  %s417_s1, 2048, %s29_s27, [#allocation7], %s344_s22, %s344_s22, %s345_s23  }
  0x23   :  { %337 = dma.done.wait [#allocation4], 256  }
  0x24   :  { %338 = vsyncadd [#allocation4], 4294967040 }
  0x25   :  { %339 = dma.done.wait [#allocation7], 2048  }
  0x26   :  { %340 = vsyncadd [#allocation7], 4294965248  ;;  %v60_v0 = vld [vmem:[#allocation6] sm:$0xff]  ;;  %v61_v1 = vld [vmem:[#allocation6 + $0x8] sm:$0xff]  ;;  %s347_s11 = smov [#allocation8]  }
  0x27   :  { %v62_v2 = vld [vmem:[#allocation6 + $0x10] sm:$0xff]  ;;  %v234_v3 = vpack.c.bf16 %v61_v1, %v60_v0  ;;  %v63_v4 = vld [vmem:[#allocation6 + $0x18] sm:$0xff]  ;;  %v64_v6 = vld [vmem:[#allocation6 + $0x20] sm:$0xff]  ;;  %s167_s12 = sshll.u32 %s347_s11, 4  ;;  %s168_s12 = int_to_ptr.vmem [resolvable:$true] %s167_s12 }
  0x28   :  { %v238_v5 = vpack.c.bf16 %v63_v4, %v62_v2  ;;  %v65_v7 = vld [vmem:[#allocation6 + $0x28] sm:$0xff]  ;;  %v58_v9 = vld [vmem:[#allocation3] sm:$0xff]  ;;  %v67_v11 = vld [vmem:[#allocation6 + $0x38] sm:$0xff]  ;;  %s315_s13 = scalar_lea.vmem %s168_s12, 256  ;;  %p320_p3 = scmp.lt.s32.totalorder %s168_s12, %s168_s12 }
  0x29   :  { %235 = vmatprep.subr.bf16.mxu0 %v234_v3  ;;  %v242_v8 = vpack.c.bf16 %v65_v7, %v64_v6  ;;  %v66_v10 = vld [vmem:[#allocation6 + $0x30] sm:$0xff]  ;;  %231 = vmatprep.mubr.f32.mxu0 %v58_v9  ;;  %v68_v13 = vld [vmem:[#allocation6 + $0x40] sm:$0xff]  ;;  %v69_v14 = vld [vmem:[#allocation6 + $0x48] sm:$0xff]  ;;  %p316_p2 = scmp.ne.s32.totalorder %s168_s12, %s315_s13  ;;  %p321_p4 = scmp.lt.s32.totalorder %s315_s13, %s315_s13 }
  0x2a   :  { %237 = vmatpush3.bf16.msra.mxu0 %v234_v3  ;;  %v246_v12 = vpack.c.bf16 %v67_v11, %v66_v10  ;;  %v250_v15 = vpack.c.bf16 %v69_v14, %v68_v13  ;;  %v70_v16 = vld [vmem:[#allocation6 + $0x50] sm:$0xff]  ;;  %v71_v17 = vld [vmem:[#allocation6 + $0x58] sm:$0xff]  ;;  %v72_v19 = vld [vmem:[#allocation6 + $0x60] sm:$0xff] }
  0x2b   :  { %239 = vmatprep.subr.bf16.mxu0 %v238_v5  ;;  %v254_v18 = vpack.c.bf16 %v71_v17, %v70_v16  ;;  %v73_v20 = vld [vmem:[#allocation6 + $0x68] sm:$0xff]  ;;  %v74_v22 = vld [vmem:[#allocation6 + $0x70] sm:$0xff]  ;;  %v75_v23 = vld [vmem:[#allocation6 + $0x78] sm:$0xff]  ;;  %p322_p5 = por %p321_p4, %p320_p3 }
  0x2c   :  { %v258_v21 = vpack.c.bf16 %v73_v20, %v72_v19  ;;  %v262_v24 = vpack.c.bf16 %v75_v23, %v74_v22  ;;  %v59_v25 = vld [vmem:[#allocation3 + $0x8] sm:$0xff]  ;;  %v180_v26 = vld [vmem:[%s418_s2] ss:$0 sm:$0xff] }
  0x2d   :  { %p323_p6 = pnand %p322_p5, %p316_p2 }
  0x2e   :  { %241 = vmatpush3.bf16.msra.mxu0 %v238_v5 }
  0x2f   :  { %243 = vmatprep.subr.bf16.mxu0 %v242_v8 }
  0x32   :  { %245 = vmatpush3.bf16.msra.mxu0 %v242_v8 }
  0x33   :  { %247 = vmatprep.subr.bf16.mxu0 %v246_v12 }
  0x36   :  { %249 = vmatpush3.bf16.msra.mxu0 %v246_v12 }
  0x37   :  { %251 = vmatprep.subr.bf16.mxu0 %v250_v15 }
  0x3a   :  { %253 = vmatpush3.bf16.msra.mxu0 %v250_v15 }
  0x3b   :  { %255 = vmatprep.subr.bf16.mxu0 %v254_v18 }
  0x3e   :  { %257 = vmatpush3.bf16.msra.mxu0 %v254_v18 }
  0x3f   :  { %259 = vmatprep.subr.bf16.mxu0 %v258_v21 }
  0x42   :  { %261 = vmatpush3.bf16.msra.mxu0 %v258_v21 }
  0x43   :  { %263 = vmatprep.subr.bf16.mxu0 %v262_v24 }
  0x46   :  { %265 = vmatpush3.bf16.msra.mxu0 %v262_v24 }
  0x49   :  { %232 = vmatmul.mubr.f32.vlgmr.msra.gmra.mrb[0].mxu0 %v59_v25 }
 0x11c   :  { %v233_v27 = vpop.f32.mrb[0].mxu0 }
 0x11d   :  { %v152_v28 = vadd.f32 %v233_v27, %v180_v26  ;;  %v142_v29 = vpop.f32.mrb[1].mxu0 }
 0x11e   :  { %v151_v30 = vadd.f32 %v180_v26, %v142_v29 }
 0x11f   :  { %161 = vst [vmem:[#allocation8 + $0x8] sm:$0xff] %v152_v28 }
 0x120   :  { %160 = vst [vmem:[#allocation8] sm:$0xff] %v151_v30 }
 0x121   :  { %326 = shalt.err (!%p323_p6)
}
 0x122   :  { %s327_s2 = scalar_lea.hbm %s419_s3, 256 }
 0x123   :  { %p328_p7 = scmp.ne.s32.totalorder %s419_s3, %s327_s2  ;;  %p331_p8 = scmp.lt.u32.totalorder %s327_s2, %s419_s3 }
 0x125   :  { %p333_p9 = pnand %p331_p8, %p328_p7 }
 0x127   :  { %336 = shalt.err (!%p333_p9)
}
 0x128   :  { %173 = dma.vmem_to_hbm [thread:$0]  %s168_s12, 256, %s419_s3, [#allocation5], %s344_s22, %s344_s22, %s345_s23  }
 0x129   :  { %341 = dma.done.wait [#allocation5], 256  }
 0x12a   :  { %342 = vsyncadd [#allocation5], 4294967040 }
 0x12b   :  { %177 = vsyncpa [#allocation4], 1 }
 0x12c   :  { %178 = vsyncpa [#allocation7], 1 }
 0x12d   :  { %179 = vsyncpa [#allocation5], 1 }

</bundles_post_ra>
